<compile_context>
chip_gen: v7x
topology: tpu7x:2x2x1
jax: 0.10.0
libtpu: 0.0.40
codegen_flags: <defaults>
</compile_context>

<pallas_src>
import functools

import jax
import jax.numpy as jnp
from jax.experimental import pallas as pl
from jax.experimental.pallas import tpu as pltpu


def _vmem_limit_bytes():
    """Generation-aware scoped-VMEM cap (v5e/v6e: 128 MiB phys, v7x: 64 MiB)."""
    try:
        cap = int(pltpu.get_tpu_info().vmem_capacity_bytes)
    except Exception:
        cap = 64 * 1024 * 1024
    return max(32 * 1024 * 1024, min((cap * 3) // 4, 96 * 1024 * 1024))


# --------------------------------------------------------------------------
# shared in-kernel helpers
# --------------------------------------------------------------------------
def _load_padded(x_ref, xp_ref, *, HW, OFF, L):
    """Copy the (1, Cin, HW) block into a flat-padded VMEM scratch.

    Scratch layout: [0, OFF) zero halo, [OFF, OFF+HW) image, [OFF+HW, OFF+HW+L)
    zero halo.  OFF is a 128-aligned offset >= L so the interior store is a
    clean lane-aligned vst."""
    Cin = x_ref.shape[1]
    if OFF > 0:
        xp_ref[:, :OFF] = jnp.zeros((Cin, OFF), jnp.float32)
    if L > 0:
        xp_ref[:, OFF + HW:] = jnp.zeros((Cin, L), jnp.float32)
    xp_ref[:, OFF:OFF + HW] = x_ref[0]


def _depthwise(xp_ref, wdw, mask, *, H, W, K, pad, OFF):
    """K*K-tap depthwise conv on the flat-padded image.

    Each tap is a static lane slice; boundary handling uses the hoisted
    (K*K, HW) 0/1 mask (pixel-position only, precomputed in the wrapper)."""
    HW = H * W
    L = pad * W + pad
    Cin = wdw.shape[0]
    acc = jnp.zeros((Cin, HW), jnp.float32)
    for kh in range(K):
        for kw in range(K):
            t = kh * K + kw
            start = OFF - L + kh * W + kw            # static lane offset
            shifted = xp_ref[:, start:start + HW]    # (Cin, HW)
            w_t = wdw[:, t:t + 1]                    # (Cin, 1)
            if kh == pad and kw == pad:
                acc = acc + shifted * w_t            # centre tap always valid
            else:
                acc = acc + (shifted * mask[t:t + 1, :]) * w_t
    return acc


def _pointwise(wpw, y, use_mxu):
    """1x1 conv: bf16-in / f32-acc MXU matmul for realistic channel counts,
    unrolled VPU FMAs for tiny ones (MXU would be <1% utilised)."""
    if use_mxu:
        return jnp.dot(wpw.astype(jnp.bfloat16), y.astype(jnp.bfloat16),
                       preferred_element_type=jnp.float32)
    Cout, Cin = wpw.shape
    z = jnp.zeros((Cout, y.shape[1]), jnp.float32)
    for c in range(Cin):
        z = z + wpw[:, c:c + 1] * y[c:c + 1, :]
    return z


def _fold_bn(s_ref, ss_ref, g_ref, b_ref, *, ns, inv_count, eps):
    """Fold training-mode BN (sum shard partials) into one per-channel FMA."""
    s = s_ref[0]
    ss = ss_ref[0]
    for k in range(1, ns):
        s = s + s_ref[k]
        ss = ss + ss_ref[k]
    mean = s * inv_count
    var = jnp.maximum(ss * inv_count - mean * mean, 0.0)
    scale = g_ref[...] * jax.lax.rsqrt(var + eps)
    bias = b_ref[...] - mean * scale
    return scale, bias


# --------------------------------------------------------------------------
# phase 1: depthwise conv -> BN1 sum / sumsq (per-shard accumulators)
# --------------------------------------------------------------------------
def _dw_stats_kernel(x_ref, wdw_ref, mask_ref, s1_ref, ss1_ref, xp_ref,
                     *, H, W, K, pad, OFF):
    i = pl.program_id(1)
    HW = H * W
    L = pad * W + pad

    _load_padded(x_ref, xp_ref, HW=HW, OFF=OFF, L=L)
    dw = _depthwise(xp_ref, wdw_ref[...], mask_ref[...],
                    H=H, W=W, K=K, pad=pad, OFF=OFF)

    @pl.when(i == 0)
    def _():
        s1_ref[...] = jnp.zeros_like(s1_ref)
        ss1_ref[...] = jnp.zeros_like(ss1_ref)

    s1_ref[0] += jnp.sum(dw, axis=1, keepdims=True)
    ss1_ref[0] += jnp.sum(dw * dw, axis=1, keepdims=True)


# --------------------------------------------------------------------------
# phase 2: recompute depthwise -> BN1 (folded) + SiLU -> pointwise -> BN2 stats
# --------------------------------------------------------------------------
def _pw_stats_kernel(x_ref, wdw_ref, mask_ref, wpw_ref, s1_ref, ss1_ref,
                     g1_ref, b1_ref, s2_ref, ss2_ref, xp_ref,
                     *, H, W, K, pad, OFF, ns, inv_count, eps, use_mxu):
    i = pl.program_id(1)
    HW = H * W
    L = pad * W + pad

    _load_padded(x_ref, xp_ref, HW=HW, OFF=OFF, L=L)
    dw = _depthwise(xp_ref, wdw_ref[...], mask_ref[...],
                    H=H, W=W, K=K, pad=pad, OFF=OFF)

    scale1, bias1 = _fold_bn(s1_ref, ss1_ref, g1_ref, b1_ref,
                             ns=ns, inv_count=inv_count, eps=eps)
    y = dw * scale1 + bias1
    y = y * jax.nn.sigmoid(y)                         # SiLU
    z = _pointwise(wpw_ref[...], y, use_mxu)          # (Cout, HW)

    @pl.when(i == 0)
    def _():
        s2_ref[...] = jnp.zeros_like(s2_ref)
        ss2_ref[...] = jnp.zeros_like(ss2_ref)

    s2_ref[0] += jnp.sum(z, axis=1, keepdims=True)
    ss2_ref[0] += jnp.sum(z * z, axis=1, keepdims=True)


# --------------------------------------------------------------------------
# phase 3: recompute everything -> BN2 (folded) + SiLU, lane-dense writeback
# --------------------------------------------------------------------------
def _out_kernel(x_ref, wdw_ref, mask_ref, wpw_ref, s1_ref, ss1_ref, g1_ref,
                b1_ref, s2_ref, ss2_ref, g2_ref, b2_ref, o_ref, xp_ref,
                *, H, W, K, pad, OFF, ns, inv_count, eps, use_mxu):
    HW = H * W
    L = pad * W + pad

    _load_padded(x_ref, xp_ref, HW=HW, OFF=OFF, L=L)
    dw = _depthwise(xp_ref, wdw_ref[...], mask_ref[...],
                    H=H, W=W, K=K, pad=pad, OFF=OFF)

    scale1, bias1 = _fold_bn(s1_ref, ss1_ref, g1_ref, b1_ref,
                             ns=ns, inv_count=inv_count, eps=eps)
    y = dw * scale1 + bias1
    y = y * jax.nn.sigmoid(y)
    z = _pointwise(wpw_ref[...], y, use_mxu)

    scale2, bias2 = _fold_bn(s2_ref, ss2_ref, g2_ref, b2_ref,
                             ns=ns, inv_count=inv_count, eps=eps)
    a = z * scale2 + bias2
    o_ref[0] = a * jax.nn.sigmoid(a)


# --------------------------------------------------------------------------
# wrapper
# --------------------------------------------------------------------------
def separable_bn_act_block(x_nchw, w_dw, w_pw, gamma1, beta1, gamma2, beta2,
                           *, padding=1, stride=1, eps=1e-5):
    """x_nchw: [N, Cin, H, W] (PyTorch NCHW).  Returns [N, Cout, H, W]."""
    assert stride == 1, "only stride=1 implemented"
    # TODO(synk): stride > 1 would need strided output indexing.
    N, Cin, H, W = (int(d) for d in x_nchw.shape)
    K = int(w_dw.shape[2])
    Cout = int(w_pw.shape[0])
    assert int(w_dw.shape[3]) == K and K == 2 * padding + 1, \
        "only 'same' depthwise convs (K == 2*pad + 1) implemented"

    HW = H * W
    L = padding * W + padding            # flat halo so every tap is a static slice
    OFF = -(-L // 128) * 128             # 128-aligned interior offset (>= L)
    PADW = OFF + HW + L
    inv_count = 1.0 / float(N * HW)
    f32 = jnp.float32

    # Lane-dense layout: [N, Cin, H*W].  Free reshapes, no transposes, no pad.
    x = x_nchw.reshape(N, Cin, HW).astype(f32)
    wdw = w_dw.reshape(Cin, K * K).astype(f32)
    wpw = w_pw.reshape(Cout, Cin).astype(f32)
    g1 = gamma1.reshape(Cin, 1).astype(f32)
    b1 = beta1.reshape(Cin, 1).astype(f32)
    g2 = gamma2.reshape(Cout, 1).astype(f32)
    b2 = beta2.reshape(Cout, 1).astype(f32)

    # Hoisted tap-validity masks (pixel-position only), one row per tap.
    pix = jnp.arange(HW, dtype=jnp.int32)
    hh, ww = pix // W, pix % W
    rows = []
    for kh in range(K):
        for kw in range(K):
            dh, dwc = kh - padding, kw - padding
            rows.append((hh + dh >= 0) & (hh + dh < H) &
                        (ww + dwc >= 0) & (ww + dwc < W))
    mask = jnp.stack(rows, 0).astype(f32)            # (K*K, HW)

    # Megacore: shard the BN accumulators across 2 cores when the batch splits
    # evenly (each shard accumulates its own contiguous image range).
    NS = 2 if (N >= 2 and N % 2 == 0) else 1
    NPER = N // NS
    use_mxu = min(Cin, Cout) >= 64                   # 256-wide MXU underutilised below
    vmem_limit = _vmem_limit_bytes()

    def cparams(sems):
        return pltpu.CompilerParams(dimension_semantics=sems,
                                    vmem_limit_bytes=vmem_limit)

    x_map = lambda s, i: (s * NPER + i, 0, 0)        # image index = shard*NPER + i
    bcast2 = lambda s, i: (0, 0)
    bcast3 = lambda s, i: (0, 0, 0)
    shard = lambda s, i: (s, 0, 0)

    # ---------------- phase 1: depthwise conv + BN1 stats -------------------
    s1, ss1 = pl.pallas_call(
        functools.partial(_dw_stats_kernel, H=H, W=W, K=K, pad=padding, OFF=OFF),
        grid=(NS, NPER),
        in_specs=[
            pl.BlockSpec((1, Cin, HW), x_map),
            pl.BlockSpec((Cin, K * K), bcast2),
            pl.BlockSpec((K * K, HW), bcast2),
        ],
        out_specs=[
            pl.BlockSpec((1, Cin, 1), shard),
            pl.BlockSpec((1, Cin, 1), shard),
        ],
        out_shape=[
            jax.ShapeDtypeStruct((NS, Cin, 1), f32),
            jax.ShapeDtypeStruct((NS, Cin, 1), f32),
        ],
        scratch_shapes=[pltpu.VMEM((Cin, PADW), f32)],
        compiler_params=cparams(("parallel", "arbitrary")),
    )(x, wdw, mask)

    # ------ phase 2: recompute dw, BN1 + SiLU + pointwise + BN2 stats -------
    s2, ss2 = pl.pallas_call(
        functools.partial(_pw_stats_kernel, H=H, W=W, K=K, pad=padding, OFF=OFF,
                          ns=NS, inv_count=inv_count, eps=float(eps),
                          use_mxu=use_mxu),
        grid=(NS, NPER),
        in_specs=[
            pl.BlockSpec((1, Cin, HW), x_map),
            pl.BlockSpec((Cin, K * K), bcast2),
            pl.BlockSpec((K * K, HW), bcast2),
            pl.BlockSpec((Cout, Cin), bcast2),
            pl.BlockSpec((NS, Cin, 1), bcast3),
            pl.BlockSpec((NS, Cin, 1), bcast3),
            pl.BlockSpec((Cin, 1), bcast2),
            pl.BlockSpec((Cin, 1), bcast2),
        ],
        out_specs=[
            pl.BlockSpec((1, Cout, 1), shard),
            pl.BlockSpec((1, Cout, 1), shard),
        ],
        out_shape=[
            jax.ShapeDtypeStruct((NS, Cout, 1), f32),
            jax.ShapeDtypeStruct((NS, Cout, 1), f32),
        ],
        scratch_shapes=[pltpu.VMEM((Cin, PADW), f32)],
        compiler_params=cparams(("parallel", "arbitrary")),
    )(x, wdw, mask, wpw, s1, ss1, g1, b1)

    # -------- phase 3: recompute, BN2 + SiLU, lane-dense output store -------
    out = pl.pallas_call(
        functools.partial(_out_kernel, H=H, W=W, K=K, pad=padding, OFF=OFF,
                          ns=NS, inv_count=inv_count, eps=float(eps),
                          use_mxu=use_mxu),
        grid=(N,),
        in_specs=[
            pl.BlockSpec((1, Cin, HW), lambda n: (n, 0, 0)),
            pl.BlockSpec((Cin, K * K), lambda n: (0, 0)),
            pl.BlockSpec((K * K, HW), lambda n: (0, 0)),
            pl.BlockSpec((Cout, Cin), lambda n: (0, 0)),
            pl.BlockSpec((NS, Cin, 1), lambda n: (0, 0, 0)),
            pl.BlockSpec((NS, Cin, 1), lambda n: (0, 0, 0)),
            pl.BlockSpec((Cin, 1), lambda n: (0, 0)),
            pl.BlockSpec((Cin, 1), lambda n: (0, 0)),
            pl.BlockSpec((NS, Cout, 1), lambda n: (0, 0, 0)),
            pl.BlockSpec((NS, Cout, 1), lambda n: (0, 0, 0)),
            pl.BlockSpec((Cout, 1), lambda n: (0, 0)),
            pl.BlockSpec((Cout, 1), lambda n: (0, 0)),
        ],
        out_specs=pl.BlockSpec((1, Cout, HW), lambda n: (n, 0, 0)),
        out_shape=jax.ShapeDtypeStruct((N, Cout, HW), f32),
        scratch_shapes=[pltpu.VMEM((Cin, PADW), f32)],
        compiler_params=cparams(("parallel",)),
    )(x, wdw, mask, wpw, s1, ss1, g1, b1, s2, ss2, g2, b2)

    return out.reshape(N, Cout, H, W)                # free reshape back to NCHW


# --------------------------------------------------------------------------
# pure-JAX reference (training-mode BN) for a correctness self-check
# --------------------------------------------------------------------------
def _reference(x, w_dw, w_pw, g1, b1, g2, b2, *, padding=1, eps=1e-5):
    Cin = x.shape[1]

    def bn_train(t, g, b):
        m = jnp.mean(t, axis=(0, 2, 3), keepdims=True)
        v = jnp.mean((t - m) ** 2, axis=(0, 2, 3), keepdims=True)
        return (t - m) * jax.lax.rsqrt(v + eps) * g.reshape(1, -1, 1, 1) \
            + b.reshape(1, -1, 1, 1)

    dw = jax.lax.conv_general_dilated(
        x, w_dw, window_strides=(1, 1),
        padding=((padding, padding), (padding, padding)),
        dimension_numbers=("NCHW", "OIHW", "NCHW"),
        feature_group_count=Cin, precision=jax.lax.Precision.HIGHEST)
    y = bn_train(dw, g1, b1)
    y = y * jax.nn.sigmoid(y)
    z = jax.lax.conv_general_dilated(
        y, w_pw, window_strides=(1, 1), padding="VALID",
        dimension_numbers=("NCHW", "OIHW", "NCHW"),
        precision=jax.lax.Precision.HIGHEST)
    o = bn_train(z, g2, b2)
    return o * jax.nn.sigmoid(o)


if __name__ == "__main__":
    # small shapes consistent with the module
    N, Cin, Cout, H, W, K = 2, 4, 8, 16, 16, 3

    key = jax.random.PRNGKey(0)
    k_x, k_dw, k_pw = jax.random.split(key, 3)

    x = jax.random.normal(k_x, (N, Cin, H, W), jnp.float32)
    w_dw = 0.1 * jax.random.normal(k_dw, (Cin, 1, K, K), jnp.float32)
    w_pw = 0.1 * jax.random.normal(k_pw, (Cout, Cin, 1, 1), jnp.float32)
    gamma1 = jnp.ones((Cin,), jnp.float32)
    beta1 = jnp.zeros((Cin,), jnp.float32)
    gamma2 = jnp.ones((Cout,), jnp.float32)
    beta2 = jnp.zeros((Cout,), jnp.float32)

    out = separable_bn_act_block(x, w_dw, w_pw, gamma1, beta1, gamma2, beta2)
    out = jax.block_until_ready(out)
    assert out.shape == (N, Cout, H, W)

    ref = jax.block_until_ready(
        _reference(x, w_dw, w_pw, gamma1, beta1, gamma2, beta2))
    max_err = float(jnp.max(jnp.abs(out - ref)))
    assert jnp.allclose(out, ref, atol=1e-4, rtol=1e-4), max_err

    print("KERNEL_OK")
</pallas_src>

<mosaic_0001>
module attributes {stable_mosaic.version = 11 : i64} {
  func.func @_dw_stats_kernel(%arg0: i32, %arg1: i32, %arg2: memref<1x4x256xf32, #tpu.memory_space<vmem>>, %arg3: memref<4x9xf32, #tpu.memory_space<vmem>>, %arg4: memref<9x256xf32, #tpu.memory_space<vmem>>, %arg5: memref<1x4x1xf32, #tpu.memory_space<vmem>>, %arg6: memref<1x4x1xf32, #tpu.memory_space<vmem>>, %arg7: memref<4x401xf32, #tpu.memory_space<vmem>>) attributes {dimension_semantics = [#tpu.dimension_semantics<parallel>, #tpu.dimension_semantics<arbitrary>], iteration_bounds = array<i64: 2, 1>, scalar_prefetch = 0 : i64, scratch_operands = 1 : i64, tpu.core_type = #tpu.core_type<tc>, window_params = [{transform_indices = @transform_0, window_bounds = array<i64: 1, 4, 256>}, {pipeline_mode = #tpu.pipeline_mode<synchronous>, transform_indices = @transform_1, window_bounds = array<i64: 4, 9>}, {pipeline_mode = #tpu.pipeline_mode<synchronous>, transform_indices = @transform_2, window_bounds = array<i64: 9, 256>}, {transform_indices = @transform_3, window_bounds = array<i64: 1, 4, 1>}, {transform_indices = @transform_4, window_bounds = array<i64: 1, 4, 1>}]} {
    %cst = arith.constant 0.000000e+00 : f32
    %0 = vector.broadcast %cst : f32 to vector<4x128xf32>
    %c0 = arith.constant 0 : index
    %c0_0 = arith.constant 0 : index
    %1 = vector.load %arg7[%c0, %c0_0] : memref<4x401xf32, #tpu.memory_space<vmem>>, vector<4x128xf32>
    tpu.vector_store %arg7[%c0, %c0_0], %0 {strides = array<i32>} : memref<4x401xf32, #tpu.memory_space<vmem>>, vector<4x128xf32>,
    %cst_1 = arith.constant 0.000000e+00 : f32
    %2 = vector.broadcast %cst_1 : f32 to vector<4x17xf32>
    %c0_2 = arith.constant 0 : index
    %c384 = arith.constant 384 : index
    %3 = vector.load %arg7[%c0_2, %c384] : memref<4x401xf32, #tpu.memory_space<vmem>>, vector<4x17xf32>
    tpu.vector_store %arg7[%c0_2, %c384], %2 {strides = array<i32>} : memref<4x401xf32, #tpu.memory_space<vmem>>, vector<4x17xf32>,
    %c0_3 = arith.constant 0 : index
    %c0_4 = arith.constant 0 : index
    %c0_5 = arith.constant 0 : index
    %4 = vector.load %arg2[%c0_3, %c0_4, %c0_5] : memref<1x4x256xf32, #tpu.memory_space<vmem>>, vector<1x4x256xf32>
    %5 = vector.shape_cast %4 : vector<1x4x256xf32> to vector<4x256xf32>
    %c0_6 = arith.constant 0 : index
    %c128 = arith.constant 128 : index
    %6 = vector.load %arg7[%c0_6, %c128] : memref<4x401xf32, #tpu.memory_space<vmem>>, vector<4x256xf32>
    tpu.vector_store %arg7[%c0_6, %c128], %5 {strides = array<i32>} : memref<4x401xf32, #tpu.memory_space<vmem>>, vector<4x256xf32>,
    %c0_7 = arith.constant 0 : index
    %c0_8 = arith.constant 0 : index
    %7 = vector.load %arg3[%c0_7, %c0_8] : memref<4x9xf32, #tpu.memory_space<vmem>>, vector<4x9xf32>
    %c0_9 = arith.constant 0 : index
    %c0_10 = arith.constant 0 : index
    %8 = vector.load %arg4[%c0_9, %c0_10] : memref<9x256xf32, #tpu.memory_space<vmem>>, vector<9x256xf32>
    %cst_11 = arith.constant 0.000000e+00 : f32
    %9 = vector.broadcast %cst_11 : f32 to vector<4x256xf32>
    %c0_12 = arith.constant 0 : index
    %c111 = arith.constant 111 : index
    %10 = vector.load %arg7[%c0_12, %c111] : memref<4x401xf32, #tpu.memory_space<vmem>>, vector<4x256xf32>
    %11 = vector.extract_strided_slice %7 {offsets = [0, 0], sizes = [4, 1], strides = [1, 1]} : vector<4x9xf32> to vector<4x1xf32>
    %12 = vector.extract_strided_slice %8 {offsets = [0, 0], sizes = [1, 256], strides = [1, 1]} : vector<9x256xf32> to vector<1x256xf32>
    %13 = vector.broadcast %12 : vector<1x256xf32> to vector<4x256xf32>
    %14 = arith.mulf %10, %13 : vector<4x256xf32>
    %15 = vector.broadcast %11 : vector<4x1xf32> to vector<4x256xf32>
    %16 = arith.mulf %14, %15 : vector<4x256xf32>
    %17 = arith.addf %9, %16 : vector<4x256xf32>
    %c0_13 = arith.constant 0 : index
    %c112 = arith.constant 112 : index
    %18 = vector.load %arg7[%c0_13, %c112] : memref<4x401xf32, #tpu.memory_space<vmem>>, vector<4x256xf32>
    %19 = vector.extract_strided_slice %7 {offsets = [0, 1], sizes = [4, 1], strides = [1, 1]} : vector<4x9xf32> to vector<4x1xf32>
    %20 = vector.extract_strided_slice %8 {offsets = [1, 0], sizes = [1, 256], strides = [1, 1]} : vector<9x256xf32> to vector<1x256xf32>
    %21 = vector.broadcast %20 : vector<1x256xf32> to vector<4x256xf32>
    %22 = arith.mulf %18, %21 : vector<4x256xf32>
    %23 = vector.broadcast %19 : vector<4x1xf32> to vector<4x256xf32>
    %24 = arith.mulf %22, %23 : vector<4x256xf32>
    %25 = arith.addf %17, %24 : vector<4x256xf32>
    %c0_14 = arith.constant 0 : index
    %c113 = arith.constant 113 : index
    %26 = vector.load %arg7[%c0_14, %c113] : memref<4x401xf32, #tpu.memory_space<vmem>>, vector<4x256xf32>
    %27 = vector.extract_strided_slice %7 {offsets = [0, 2], sizes = [4, 1], strides = [1, 1]} : vector<4x9xf32> to vector<4x1xf32>
    %28 = vector.extract_strided_slice %8 {offsets = [2, 0], sizes = [1, 256], strides = [1, 1]} : vector<9x256xf32> to vector<1x256xf32>
    %29 = vector.broadcast %28 : vector<1x256xf32> to vector<4x256xf32>
    %30 = arith.mulf %26, %29 : vector<4x256xf32>
    %31 = vector.broadcast %27 : vector<4x1xf32> to vector<4x256xf32>
    %32 = arith.mulf %30, %31 : vector<4x256xf32>
    %33 = arith.addf %25, %32 : vector<4x256xf32>
    %c0_15 = arith.constant 0 : index
    %c127 = arith.constant 127 : index
    %34 = vector.load %arg7[%c0_15, %c127] : memref<4x401xf32, #tpu.memory_space<vmem>>, vector<4x256xf32>
    %35 = vector.extract_strided_slice %7 {offsets = [0, 3], sizes = [4, 1], strides = [1, 1]} : vector<4x9xf32> to vector<4x1xf32>
    %36 = vector.extract_strided_slice %8 {offsets = [3, 0], sizes = [1, 256], strides = [1, 1]} : vector<9x256xf32> to vector<1x256xf32>
    %37 = vector.broadcast %36 : vector<1x256xf32> to vector<4x256xf32>
    %38 = arith.mulf %34, %37 : vector<4x256xf32>
    %39 = vector.broadcast %35 : vector<4x1xf32> to vector<4x256xf32>
    %40 = arith.mulf %38, %39 : vector<4x256xf32>
    %41 = arith.addf %33, %40 : vector<4x256xf32>
    %c0_16 = arith.constant 0 : index
    %c128_17 = arith.constant 128 : index
    %42 = vector.load %arg7[%c0_16, %c128_17] : memref<4x401xf32, #tpu.memory_space<vmem>>, vector<4x256xf32>
    %43 = vector.extract_strided_slice %7 {offsets = [0, 4], sizes = [4, 1], strides = [1, 1]} : vector<4x9xf32> to vector<4x1xf32>
    %44 = vector.broadcast %43 : vector<4x1xf32> to vector<4x256xf32>
    %45 = arith.mulf %42, %44 : vector<4x256xf32>
    %46 = arith.addf %41, %45 : vector<4x256xf32>
    %c0_18 = arith.constant 0 : index
    %c129 = arith.constant 129 : index
    %47 = vector.load %arg7[%c0_18, %c129] : memref<4x401xf32, #tpu.memory_space<vmem>>, vector<4x256xf32>
    %48 = vector.extract_strided_slice %7 {offsets = [0, 5], sizes = [4, 1], strides = [1, 1]} : vector<4x9xf32> to vector<4x1xf32>
    %49 = vector.extract_strided_slice %8 {offsets = [5, 0], sizes = [1, 256], strides = [1, 1]} : vector<9x256xf32> to vector<1x256xf32>
    %50 = vector.broadcast %49 : vector<1x256xf32> to vector<4x256xf32>
    %51 = arith.mulf %47, %50 : vector<4x256xf32>
    %52 = vector.broadcast %48 : vector<4x1xf32> to vector<4x256xf32>
    %53 = arith.mulf %51, %52 : vector<4x256xf32>
    %54 = arith.addf %46, %53 : vector<4x256xf32>
    %c0_19 = arith.constant 0 : index
    %c143 = arith.constant 143 : index
    %55 = vector.load %arg7[%c0_19, %c143] : memref<4x401xf32, #tpu.memory_space<vmem>>, vector<4x256xf32>
    %56 = vector.extract_strided_slice %7 {offsets = [0, 6], sizes = [4, 1], strides = [1, 1]} : vector<4x9xf32> to vector<4x1xf32>
    %57 = vector.extract_strided_slice %8 {offsets = [6, 0], sizes = [1, 256], strides = [1, 1]} : vector<9x256xf32> to vector<1x256xf32>
    %58 = vector.broadcast %57 : vector<1x256xf32> to vector<4x256xf32>
    %59 = arith.mulf %55, %58 : vector<4x256xf32>
    %60 = vector.broadcast %56 : vector<4x1xf32> to vector<4x256xf32>
    %61 = arith.mulf %59, %60 : vector<4x256xf32>
    %62 = arith.addf %54, %61 : vector<4x256xf32>
    %c0_20 = arith.constant 0 : index
    %c144 = arith.constant 144 : index
    %63 = vector.load %arg7[%c0_20, %c144] : memref<4x401xf32, #tpu.memory_space<vmem>>, vector<4x256xf32>
    %64 = vector.extract_strided_slice %7 {offsets = [0, 7], sizes = [4, 1], strides = [1, 1]} : vector<4x9xf32> to vector<4x1xf32>
    %65 = vector.extract_strided_slice %8 {offsets = [7, 0], sizes = [1, 256], strides = [1, 1]} : vector<9x256xf32> to vector<1x256xf32>
    %66 = vector.broadcast %65 : vector<1x256xf32> to vector<4x256xf32>
    %67 = arith.mulf %63, %66 : vector<4x256xf32>
    %68 = vector.broadcast %64 : vector<4x1xf32> to vector<4x256xf32>
    %69 = arith.mulf %67, %68 : vector<4x256xf32>
    %70 = arith.addf %62, %69 : vector<4x256xf32>
    %c0_21 = arith.constant 0 : index
    %c145 = arith.constant 145 : index
    %71 = vector.load %arg7[%c0_21, %c145] : memref<4x401xf32, #tpu.memory_space<vmem>>, vector<4x256xf32>
    %72 = vector.extract_strided_slice %7 {offsets = [0, 8], sizes = [4, 1], strides = [1, 1]} : vector<4x9xf32> to vector<4x1xf32>
    %73 = vector.extract_strided_slice %8 {offsets = [8, 0], sizes = [1, 256], strides = [1, 1]} : vector<9x256xf32> to vector<1x256xf32>
    %74 = vector.broadcast %73 : vector<1x256xf32> to vector<4x256xf32>
    %75 = arith.mulf %71, %74 : vector<4x256xf32>
    %76 = vector.broadcast %72 : vector<4x1xf32> to vector<4x256xf32>
    %77 = arith.mulf %75, %76 : vector<4x256xf32>
    %78 = arith.addf %70, %77 : vector<4x256xf32>
    %c0_i32 = arith.constant 0 : i32
    %79 = arith.cmpi eq, %arg1, %c0_i32 : i32
    %80 = arith.extui %79 : i1 to i32
    %c0_i32_22 = arith.constant 0 : i32
    %81 = arith.cmpi ne, %80, %c0_i32_22 : i32
    scf.if %81 {
      %cst_37 = arith.constant 0.000000e+00 : f32
      %99 = vector.broadcast %cst_37 : f32 to vector<1x4x1xf32>
      %c0_38 = arith.constant 0 : index
      %c0_39 = arith.constant 0 : index
      %c0_40 = arith.constant 0 : index
      %100 = vector.load %arg5[%c0_38, %c0_39, %c0_40] : memref<1x4x1xf32, #tpu.memory_space<vmem>>, vector<1x4x1xf32>
      tpu.vector_store %arg5[%c0_38, %c0_39, %c0_40], %99 {strides = array<i32>} : memref<1x4x1xf32, #tpu.memory_space<vmem>>, vector<1x4x1xf32>,
      %cst_41 = arith.constant 0.000000e+00 : f32
      %101 = vector.broadcast %cst_41 : f32 to vector<1x4x1xf32>
      %c0_42 = arith.constant 0 : index
      %c0_43 = arith.constant 0 : index
      %c0_44 = arith.constant 0 : index
      %102 = vector.load %arg6[%c0_42, %c0_43, %c0_44] : memref<1x4x1xf32, #tpu.memory_space<vmem>>, vector<1x4x1xf32>
      tpu.vector_store %arg6[%c0_42, %c0_43, %c0_44], %101 {strides = array<i32>} : memref<1x4x1xf32, #tpu.memory_space<vmem>>, vector<1x4x1xf32>,
    } else {
    }
    %c0_23 = arith.constant 0 : index
    %c0_24 = arith.constant 0 : index
    %c0_25 = arith.constant 0 : index
    %82 = vector.load %arg5[%c0_23, %c0_24, %c0_25] : memref<1x4x1xf32, #tpu.memory_space<vmem>>, vector<1x4x1xf32>
    %83 = vector.shape_cast %82 : vector<1x4x1xf32> to vector<4x1xf32>
    %cst_26 = arith.constant dense<0.000000e+00> : vector<4xf32>
    %84 = vector.multi_reduction <add>, %78, %cst_26 [1] : vector<4x256xf32> to vector<4xf32>
    %85 = vector.shape_cast %84 : vector<4xf32> to vector<4x1xf32>
    %86 = arith.addf %83, %85 : vector<4x1xf32>
    %c0_27 = arith.constant 0 : index
    %c0_28 = arith.constant 0 : index
    %c0_29 = arith.constant 0 : index
    %87 = vector.load %arg5[%c0_27, %c0_28, %c0_29] : memref<1x4x1xf32, #tpu.memory_space<vmem>>, vector<1x4x1xf32>
    %88 = vector.shape_cast %87 : vector<1x4x1xf32> to vector<4x1xf32>
    %89 = vector.shape_cast %86 : vector<4x1xf32> to vector<1x4x1xf32>
    tpu.vector_store %arg5[%c0_27, %c0_28, %c0_29], %89 {strides = array<i32>} : memref<1x4x1xf32, #tpu.memory_space<vmem>>, vector<1x4x1xf32>,
    %c0_30 = arith.constant 0 : index
    %c0_31 = arith.constant 0 : index
    %c0_32 = arith.constant 0 : index
    %90 = vector.load %arg6[%c0_30, %c0_31, %c0_32] : memref<1x4x1xf32, #tpu.memory_space<vmem>>, vector<1x4x1xf32>
    %91 = vector.shape_cast %90 : vector<1x4x1xf32> to vector<4x1xf32>
    %92 = arith.mulf %78, %78 : vector<4x256xf32>
    %cst_33 = arith.constant dense<0.000000e+00> : vector<4xf32>
    %93 = vector.multi_reduction <add>, %92, %cst_33 [1] : vector<4x256xf32> to vector<4xf32>
    %94 = vector.shape_cast %93 : vector<4xf32> to vector<4x1xf32>
    %95 = arith.addf %91, %94 : vector<4x1xf32>
    %c0_34 = arith.constant 0 : index
    %c0_35 = arith.constant 0 : index
    %c0_36 = arith.constant 0 : index
    %96 = vector.load %arg6[%c0_34, %c0_35, %c0_36] : memref<1x4x1xf32, #tpu.memory_space<vmem>>, vector<1x4x1xf32>
    %97 = vector.shape_cast %96 : vector<1x4x1xf32> to vector<4x1xf32>
    %98 = vector.shape_cast %95 : vector<4x1xf32> to vector<1x4x1xf32>
    tpu.vector_store %arg6[%c0_34, %c0_35, %c0_36], %98 {strides = array<i32>} : memref<1x4x1xf32, #tpu.memory_space<vmem>>, vector<1x4x1xf32>,
    return
  }
  func.func @transform_0(%arg0: i32, %arg1: i32) -> (i32, i32, i32) {
    %c1_i32 = arith.constant 1 : i32
    %0 = arith.muli %arg0, %c1_i32 : i32
    %1 = arith.addi %0, %arg1 : i32
    %c0_i32 = arith.constant 0 : i32
    %c0_i32_0 = arith.constant 0 : i32
    %c0_i32_1 = arith.constant 0 : i32
    return %1, %c0_i32, %c0_i32_0 : i32, i32, i32
  }
  func.func @transform_1(%arg0: i32, %arg1: i32) -> (i32, i32) {
    %c0_i32 = arith.constant 0 : i32
    %c0_i32_0 = arith.constant 0 : i32
    %c0_i32_1 = arith.constant 0 : i32
    return %c0_i32, %c0_i32_0 : i32, i32
  }
  func.func @transform_2(%arg0: i32, %arg1: i32) -> (i32, i32) {
    %c0_i32 = arith.constant 0 : i32
    %c0_i32_0 = arith.constant 0 : i32
    %c0_i32_1 = arith.constant 0 : i32
    return %c0_i32, %c0_i32_0 : i32, i32
  }
  func.func @transform_3(%arg0: i32, %arg1: i32) -> (i32, i32, i32) {
    %c0_i32 = arith.constant 0 : i32
    %c0_i32_0 = arith.constant 0 : i32
    %c0_i32_1 = arith.constant 0 : i32
    return %arg0, %c0_i32, %c0_i32_0 : i32, i32, i32
  }
  func.func @transform_4(%arg0: i32, %arg1: i32) -> (i32, i32, i32) {
    %c0_i32 = arith.constant 0 : i32
    %c0_i32_0 = arith.constant 0 : i32
    %c0_i32_1 = arith.constant 0 : i32
    return %arg0, %c0_i32, %c0_i32_0 : i32, i32, i32
  }
}

</mosaic_0001>

<bundles_post_ra>
// kernel: tpu_custom_call.1
= control target key start
LH: loop header
LB: loop body
LE: loop exit
PB: predicated region body
PF: predicated region fallthrough
CT: control target
= control target key end

     0   :  { %10 = vsyncpa [#allocation4], 0  ;;  %s1495_s0 = inlined_call_operand.hbm [shape: f32[2,4,256], index: 0, kind: input, shape index: {}]   ;;  %s1496_s1 = inlined_call_operand.hbm [shape: f32[4,9], index: 1, kind: input, shape index: {}]   ;;  %s1497_s2 = inlined_call_operand.hbm [shape: f32[9,256], index: 2, kind: input, shape index: {}]   ;;  %s1498_s3 = inlined_call_operand.vmem [shape: f32[2,4,1], index: 3, kind: output, shape index: {0}]   ;;  %s1499_s4 = inlined_call_operand.vmem [shape: f32[2,4,1], index: 4, kind: output, shape index: {1}]  }
   0x1   :  { %12 = vsyncpa [#allocation4 + $0x1], 0 }
   0x2   :  { %13 = vsyncpa [#allocation6], 0  ;;  %s1187_s15 = smov 0   ;;  %s1189_s16 = smov 0  }
   0x3   :  { %s1191_s17 = smov 0   ;;  %s1193_s18 = smov 0  }
   0x4   :  { %s1195_s19 = smov 0   ;;  %s1197_s20 = smov 0  }
   0x5 LB: > { %s859_s21 = sadd.s32 4294967295, %s1131_s20   ;;  %p53_p0 = scmp.ne.s32.totalorder %s1115_s16, %s1111_s15  ;;  %s1131_s20 = sphi %s1197_s20, %s19_s20   ;;  %s1127_s19 = sphi %s1195_s19, %s1517_s19   ;;  %s1123_s18 = sphi %s1193_s18, %s1516_s18   ;;  %s1119_s17 = sphi %s1191_s17, %s1515_s17   ;;  %s1115_s16 = sphi %s1189_s16, %s1514_s16   ;;  %s1111_s15 = sphi %s1187_s15, %s1513_s15  }
   0x6   : > { %p1217_p1 = scmp.eq.s32.totalorder %s859_s21, 0  ;;  %p861_p2 = scmp.ge.s32.totalorder %s1131_s20, 1 }
   0x7   : > { %p158_p3 = scmp.lt.s32.totalorder %s1131_s20, 3  ;;  %s1133_s25 = smov [#allocation5]  }
   0x8   : > { %s1504_s22 = scalar_select %p1217_p1, 1, 0 }
   0x9   : > { %p1225_p4 = por %p1217_p1, %p53_p0  ;;  %p1229_p5 = pnand %p861_p2, %p158_p3 }
   0xa   : > { %s171_s26 = sshll.u32 %s1133_s25, 4  ;;  %s1134_s27 = smov [#allocation7]   ;;  %s172_s26 = int_to_ptr.vmem [resolvable:$true] %s171_s26 }
   0xb   : > { %s1505_s23 = scalar_select %p1225_p4, 1, 0 }
   0xc   : > { %s1506_s24 = scalar_select %p1229_p5, 1, 0 }
   0xd   : > { %p889_p6 = pneg %p1229_p5  ;;  %s181_s28 = sshll.u32 %s1134_s27, 4  ;;  %s1241_s28 = int_to_ptr.vmem [resolvable:$true] %s181_s28 }
   0xe   : > { %s991_s6 = scalar_lea.hbm %s1496_s1, 64 }
   0xf   : > { %p1237_p7 = pnand %p889_p6, %p1217_p1  ;;  %p992_p8 = scmp.ne.s32.totalorder %s1496_s1, %s991_s6 }
  0x10   : > { %p998_p12 = scmp.lt.u32.totalorder %s991_s6, %s1496_s1 }
  0x11   : > { %p993_p9 = pneg %p1237_p7 }
  0x13   : > { %p994_p10 = pnand %p993_p9, %p992_p8 }
  0x15   : > { %p995_p11 = pneg %p994_p10 }
  0x17   : > { %p1000_p13 = pnand %p998_p12, %p995_p11 }
  0x19   : > { %1003 = shalt.err (!%p1000_p13)
}
  0x1a   : > { %s1004_s11 = scalar_lea.vmem %s172_s26, 64  ;;  %p1012_p6 = scmp.lt.s32.totalorder %s172_s26, %s172_s26 }
  0x1b   : > { %p1005_p0 = scmp.ne.s32.totalorder %s172_s26, %s1004_s11  ;;  %p1013_p1 = scmp.lt.s32.totalorder %s1004_s11, %s1004_s11 }
  0x1d   : > { %p1007_p2 = pnand %p1005_p0, %p993_p9  ;;  %p1014_p4 = por %p1013_p1, %p1012_p6 }
  0x1f   : > { %p1008_p3 = pneg %p1007_p2 }
  0x21   : > { %p1015_p5 = pnand %p1014_p4, %p1008_p3 }
  0x23   : > { %1018 = shalt.err (!%p1015_p5)
}
  0x24   : > { %892 = dma.hbm_to_vmem [thread:$0]  (!%p1237_p7), %s1496_s1, 64, %s172_s26, [#allocation6]  }
  0x25   : > { %s1019_s21 = scalar_lea.hbm %s1497_s2, 512 }
  0x26   : > { %p1020_p8 = scmp.ne.s32.totalorder %s1497_s2, %s1019_s21  ;;  %p1026_p5 = scmp.lt.u32.totalorder %s1019_s21, %s1497_s2 }
  0x28   : > { %p1022_p1 = pnand %p1020_p8, %p993_p9 }
  0x2a   : > { %p1023_p4 = pneg %p1022_p1 }
  0x2c   : > { %p1028_p10 = pnand %p1026_p5, %p1023_p4 }
  0x2e   : > { %1031 = shalt.err (!%p1028_p10)
}
  0x2f   : > { %s1032_s26 = scalar_lea.vmem %s1241_s28, 512  ;;  %p1040_p0 = scmp.lt.s32.totalorder %s1241_s28, %s1241_s28 }
  0x30   : > { %p1033_p11 = scmp.ne.s32.totalorder %s1241_s28, %s1032_s26  ;;  %p1041_p2 = scmp.lt.s32.totalorder %s1032_s26, %s1032_s26 }
  0x32   : > { %p1035_p12 = pnand %p1033_p11, %p993_p9  ;;  %p1042_p3 = por %p1041_p2, %p1040_p0 }
  0x34   : > { %p1036_p13 = pneg %p1035_p12 }
  0x36   : > { %p1043_p6 = pnand %p1042_p3, %p1036_p13 }
  0x38   : > { %1046 = shalt.err (!%p1043_p6)
}
  0x39   : > { %s1135_s6 = smov 256   ;;  %s1136_s7 = smov 16  }
  0x3a   : > { %895 = dma.hbm_to_vmem [thread:$0]  (!%p1237_p7), %s1497_s2, 512, %s1241_s28, [#allocation6], %s1135_s6, %s1135_s6, %s1136_s7  }
  0x3b   : > { %s31_s10 = sadd.s32 1, %s1127_s19  ;;  %s40_s11 = sadd.s32 1, %s1119_s17 }
  0x3c   : > { %p33_p9 = scmp.ge.s32.totalorder %s31_s10, 2  ;;  %p47_p8 = scmp.ne.s32.totalorder %s1119_s17, %s1115_s16 }
  0x3d   : > { %p48_p1 = scmp.eq.s32.totalorder %s1131_s20, 0  ;;  %p902_p4 = scmp.lt.s32.totalorder %s1131_s20, 2 }
  0x3e   : > { %s1519_s10 = smov (%p33_p9, %s31_s10), 0  ;;  %s195_s12 = sand.u32 1, %s1119_s17  }
  0x3f   : > { %p49_p5 = por %p48_p1, %p47_p8  ;;  %s37_s13 = ssub.s32 %s1127_s19, %s1519_s10 }
  0x40   : > { %p38_p10 = scmp.eq.s32.totalorder %s37_s13, 0  ;;  %s865_s14 = sshll.u32 %s195_s12, 3 }
  0x41   : > { %s878_s29 = sshll.u32 %s1127_s19, 7  ;;  %s199_s27 = scalar_lea.vmem [#allocation3], %s865_s14 }
  0x42   : > { %s1303_s15 = scalar_select %p38_p10, %s1119_s17, %s40_s11  }
  0x43   : > { %s1308_s25 = scalar_lea.hbm %s1495_s0, %s878_s29  ;;  %s208_s30 = sshll.u32 %s199_s27, 4  ;;  %s1310_s30 = int_to_ptr.vmem [resolvable:$true] %s208_s30 }
  0x44   : > { %p1314_p7 = pnand %p902_p4, %p49_p5  ;;  %s196_s26 = scalar_lea.sflag [#allocation4], %s195_s12 }
  0x45   : > { %s1047_s6 = scalar_lea.hbm %s1308_s25, 128  ;;  %s1052_s9 = scalar_lea.hbm %s1495_s0, 256 }
  0x46   : > { %p1048_p11 = scmp.ne.s32.totalorder %s1308_s25, %s1047_s6  ;;  %p1049_p12 = pneg %p1314_p7 }
  0x47   : > { %p1053_p2 = scmp.lt.u32.totalorder %s1308_s25, %s1495_s0  ;;  %p1054_p3 = scmp.lt.u32.totalorder %s1052_s9, %s1047_s6 }
  0x48   : > { %p1050_p13 = pnand %p1049_p12, %p1048_p11  ;;  %p1056_p9 = scmp.lt.u32.totalorder %s1047_s6, %s1308_s25 }
  0x49   : > { %p1055_p6 = por %p1054_p3, %p1053_p2 }
  0x4a   : > { %p1051_p0 = pneg %p1050_p13 }
  0x4b   : > { %p1057_p8 = por %p1056_p9, %p1055_p6 }
  0x4d   : > { %p1058_p1 = pnand %p1057_p8, %p1051_p0 }
  0x4f   : > { %1061 = shalt.err (!%p1058_p1)
}
  0x50   : > { %s1062_s12 = scalar_lea.vmem %s1310_s30, 128  ;;  %s1137_s14 = smov [#allocation3]  }
  0x51   : > { %p1063_p4 = scmp.ne.s32.totalorder %s1310_s30, %s1062_s12  ;;  %s1067_s29 = sshll.u32 %s1137_s14, 4  ;;  %s1068_s29 = int_to_ptr.vmem [resolvable:$false] %s1067_s29 }
  0x52   : > { %s1069_s21 = scalar_lea.vmem %s1068_s29, 256  ;;  %p1070_p11 = scmp.lt.s32.totalorder %s1310_s30, %s1068_s29 }
  0x53   : > { %p1065_p5 = pnand %p1063_p4, %p1049_p12  ;;  %p1071_p13 = scmp.lt.s32.totalorder %s1069_s21, %s1062_s12 }
  0x55   : > { %p1066_p10 = pneg %p1065_p5  ;;  %p1072_p2 = por %p1071_p13, %p1070_p11 }
  0x57   : > { %p1073_p3 = pnand %p1072_p2, %p1066_p10 }
  0x59   : > { %1076 = shalt.err (!%p1073_p3)
}
  0x5a   : > { %899 = dma.hbm_to_vmem [thread:$0]  (!%p1314_p7), %s1308_s25, 128, %s1310_s30, %s196_s26  }
  0x5b   : > { %p1509_p0 = scmp.ne.s32.totalorder %s1506_s24, 0 }
  0x5c   : > { %s219_s28 = sand.u32 (!%p1509_p0), 1, %s1115_s16   ;;  %p1510_p12 = scmp.ne.s32.totalorder (!%p1509_p0), %s1505_s23, 0 }
  0x5d   : > { %217 = sbr.rel (%p1509_p0) target bundleno = 672 (0x2a0), region = 32  ;;  %s869_s27 = sshll.u32 (!%p1509_p0), %s219_s28, 3 }
  0x5e   : > { %s220_s6 = scalar_lea.sflag (!%p1509_p0), [#allocation4], %s219_s28  ;;  %s223_s7 = scalar_lea.vmem (!%p1509_p0), [#allocation3], %s869_s27 }
  0x64   : > { %1102 = dma.done.wait (%p1510_p12), %s220_s6, 128  }
  0x65   : > { %1104 = vsyncadd (%p1510_p12), %s220_s6, 4294967168  ;;  %p1511_p6 = scmp.ne.s32.totalorder %s1504_s22, 0 }
  0x67   : > { %1106 = dma.done.wait (%p1511_p6), [#allocation6], 576  }
  0x68   : > { %1108 = vsyncadd (%p1511_p6), [#allocation6], 4294966720  ;;  %v280_v0 = vlaneseq  ;;  %v1138_v1 = vmov 3   ;;  %v1139_v2 = vmov 1   ;;  %v1358_v6 = vld [vmem:[#allocation5] sm:$0xf] }
  0x69   : > { %983 = vset.pattern.permute.xlu1 %v1138_v1  ;;  %981 = vset.pattern.permute.xlu0 %v1139_v2  ;;  %v1360_v7 = vld [vmem:[#allocation7] sm:$0xff]  ;;  %v1362_v8 = vld [vmem:[#allocation7 + $0x8] sm:$0xff]  ;;  %v1140_v9 = vmov 0.0   ;;  %s1141_s22 = smov 112   ;;  %v1142_v17 = vmov 2   ;;  %v1143_v21 = vmov 5  }
  0x6a   : > { %v1354_v3 = vshrl.u32 %v280_v0, 7  ;;  %268 = vst [vmem:[#allocation2] sm:$0xf] %v1140_v9  ;;  %439 = vperm.xlu1 %983, %v1358_v6   ;;  %339 = vperm.xlu0 %981, %v1358_v6   ;;  %v1371_v14 = vld [vmem:[%s223_s7] sm:$0xff]  ;;  %s1144_s23 = smov 113   ;;  %v1145_v25 = vmov 4  }
  0x6b   : > { %272 = vst [vmem:[#allocation2 + $0x4] sm:$0xff] %v1371_v14  ;;  %s1146_s24 = smov 127   ;;  %vm269_vm0 = vcmask 134144   ;;  %v1147_v31 = vmov 6   ;;  %s1148_s25 = smov 15   ;;  %v1150_v37 = vmov 0  }
  0x6c   : > { %v320_v4 = vsub.s32 1, %v1354_v3  ;;  %v371_v5 = vsub.s32 2, %v1354_v3  ;;  %v421_v13 = vsub.s32 3, %v1354_v3  ;;  %v540_v22 = vsub.s32 6, %v1354_v3  ;;  %270 = vst.msk [vmem:[#allocation2 + $0xc] sm:$0xf] %vm269_vm0, %v1140_v9 }
  0x6d   : > { %v491_v24 = vsub.s32 5, %v1354_v3  ;;  %v589_v28 = vsub.s32 7, %v1354_v3  ;;  %s1149_s30 = smov 1   ;;  %v1151_v38 = vmov 7   ;;  %s1152_s5 = smov 16   ;;  %v282_v39 = vsub.s32 0, %v1354_v3 }
  0x6e   : > { %v321_v10 = vrot.slane %v1360_v7, %v320_v4  ;;  %v325_v11 = vrot.slane %v1362_v8, %v320_v4  ;;  %v372_v12 = vrot.slane %v1360_v7, %v371_v5  ;;  %v376_v15 = vrot.slane %v1362_v8, %v371_v5  ;;  %982 = vset.pattern.permute.xlu0 %v1142_v17  ;;  %v874_v40 = vld [vmem:[#allocation7 + $0x10] ss:$0 sm:$0xff]  ;;  %v875_v41 = vld [vmem:[#allocation7 + $0x18] ss:$0 sm:$0xff]  ;;  %s1154_s26 = smov 17   ;;  %s1155_s8 = smov 111  }
  0x6f   : > { %v422_v19 = vrot.slane %v1360_v7, %v421_v13  ;;  %v426_v20 = vrot.slane %v1362_v8, %v421_v13  ;;  %390 = vperm.xlu0 %982, %v1358_v6   ;;  %985 = vset.pattern.permute.xlu1 %v1143_v21  ;;  %v541_v26 = vrot.slane %v1360_v7, %v540_v22  ;;  %v1153_v42 = vmov 8   ;;  %s1157_s9 = smov 126   ;;  %s1158_s11 = smov 110  }
  0x70   : > { %v328_v16 = vcombine.low %v321_v10, %v325_v11  ;;  %v379_v18 = vcombine.low %v372_v12, %v376_v15  ;;  %v545_v27 = vrot.slane %v1362_v8, %v540_v22  ;;  %v492_v29 = vrot.slane %v1360_v7, %v491_v24  ;;  %s1159_s13 = smov 96   ;;  %s1160_s12 = smov 95  }
  0x71   : > { %v429_v23 = vcombine.low %v422_v19, %v426_v20  ;;  %v496_v30 = vrot.slane %v1362_v8, %v491_v24  ;;  %v590_v33 = vrot.slane %v1360_v7, %v589_v28  ;;  %v594_v34 = vrot.slane %v1362_v8, %v589_v28  ;;  %s1161_s14 = smov 94   ;;  %p260_p7 = scmp.lt.s32.totalorder %s1123_s18, 1 }
  0x72   : > { %329 = vrot.lane.b32.xlu1 %v328_v16, %s1141_s22  ;;  %v548_v32 = vcombine.low %v541_v26, %v545_v27  ;;  %v646_v43 = vcombine.low %v874_v40, %v875_v41  ;;  %v283_v44 = vrot.slane %v1360_v7, %v282_v39  ;;  %v287_v45 = vrot.slane %v1362_v8, %v282_v39  ;;  %v317_v54 = vld [vmem:[#allocation2 + $0x8] sm:$0xf]  ;;  %v1405_v56 = vld [vmem:[#allocation2] sm:$0xff] }
  0x73   : > { %984 = vset.pattern.permute.xlu0 %v1145_v25  ;;  %v499_v35 = vcombine.low %v492_v29, %v496_v30  ;;  %v597_v36 = vcombine.low %v590_v33, %v594_v34  ;;  %v1156_v47 = vmov 839922192   ;;  %vm332_vm1 = vcmask 916480   ;;  %v368_v63 = vld [vmem:[#allocation2 + $0x8] sm:$0xf]  ;;  %s1521_s18 = smov (!%p260_p7, %s1123_s18), 1 }
  0x74   : > { %467 = vperm.xlu0 %984, %v1358_v6   ;;  %v290_v46 = vcombine.low %v283_v44, %v287_v45  ;;  %v305_v48 = vunpack.c.l.s4 %v1156_v47  ;;  %vm383_vm2 = vcmask 924672   ;;  %vm361_vm3 = vcmask 1039360   ;;  %v418_v10 = vld [vmem:[#allocation2 + $0x8] sm:$0xf]  ;;  %s872_s29 = sshll.u32 %s1521_s18, 2 }
  0x75   : > { %vm552_vm4 = vcmask 121856   ;;  %vm503_vm5 = vcmask 7168   ;;  %vm601_vm6 = vcmask 130048   ;;  %vm650_vm7 = vcmask 138240   ;;  %s1453_s27 = scalar_lea.vmem %s1498_s3, %s872_s29  ;;  %s267_s7 = scalar_lea.vmem %s1499_s4, %s872_s29 }
  0x76   : > { %380 = vrot.lane.b32.xlu1 %v379_v18, %s1144_s23  ;;  %v306_v49 = vunpack.c.0.s8 %v305_v48  ;;  %vm294_vm8 = vcmask 908288   ;;  %vm359_vm9 = vcmask 1043456   ;;  %vm411_vm10 = vcmask 1031168  }
  0x77   : > { %vm529_vm11 = vcmask 900096   ;;  %vm578_vm12 = vcmask 785408   ;;  %vm627_vm13 = vcmask 777216   ;;  %vm676_vm14 = vcmask 769024  }
  0x78   : > { %986 = vset.pattern.permute.xlu0 %v1147_v31  ;;  %v1402_v52 = vsub.s32 %v306_v49, %v1354_v3  ;;  %vm687_vm15 = vcmask 3072  }
  0x79   : > { %559 = vperm.xlu0 %986, %v1358_v6   ;;  %688 = vst.msk [vmem:[%s1453_s27] sm:$0xf] %vm687_vm15, %v1140_v9  ;;  %689 = vst.msk [vmem:[%s267_s7] sm:$0xf] %vm687_vm15, %v1140_v9 }
  0x7a   : > { %430 = vrot.lane.b32.xlu1 %v429_v23, %s1146_s24 }
  0x7d   : > { %549 = vrot.lane.b32.xlu0 %v548_v32, %s1148_s25  ;;  %v488_v32 = vld [vmem:[#allocation2 + $0xc] sm:$0xf] }
  0x7e   : > { %510 = vperm.xlu1 %985, %v1358_v6   ;;  %989 = vset.pattern.permute.xlu0 %v1150_v37 }
  0x81   : > { %598 = vrot.lane.b32.xlu0 %v597_v36, %s1152_s5 }
  0x82   : > { %500 = vrot.lane.b32.xlu1 %v499_v35, %s1149_s30 }
  0x83   : > { %987 = vset.pattern.permute.xlu1 %v1151_v38 }
  0x85   : > { %302 = vperm.xlu0 %989, %v1358_v6  }
  0x86   : > { %608 = vperm.xlu1 %987, %v1358_v6  }
  0x89   : > { %990 = vset.pattern.permute.xlu0 %v1153_v42 }
  0x8a   : > { %988 = vset.pattern.permute.xlu1 %v1153_v42 }
  0x8b   : > { %657 = vperm.xlu1 %988, %v1358_v6  }
  0x8f   : > { %647 = vrot.lane.b32.xlu1 %v646_v43, %s1154_s26  ;;  %v537_v43 = vld [vmem:[#allocation2 + $0xc] sm:$0xf] }
  0x93   : > { %291 = vrot.lane.b32.xlu1 %v290_v46, %s1155_s8 }
  0xe9   : > { %v440_v50 = vpop.permute.xlu1 %439  ;;  %v340_v51 = vpop.permute.xlu0 %339 }
  0xea   : > { %v347_v55 = vrot.slane %v340_v51, %v1402_v52  ;;  %v447_v15 = vrot.slane %v440_v50, %v1402_v52  ;;  %v586_v50 = vld [vmem:[#allocation2 + $0xc] sm:$0xf] }
  0xed   : > { %v330_v53 = vpop.permute.xlu1 %329 }
  0xee   : > { %v331_v57 = vrot.slane %v330_v53, 4  ;;  %v391_v58 = vpop.permute.xlu0 %390 }
  0xef   : > { %v398_v0 = vrot.slane %v391_v58, %v1402_v52 }
  0xf0   : > { %v333_v59 = vsel %vm332_vm1, %v331_v57, %v330_v53  ;;  %v337_v60 = vmul.f32 %v331_v57, %v317_v54  ;;  %v635_v57 = vld [vmem:[#allocation2 + $0xc] sm:$0xf] }
  0xf1   : > { %v336_v61 = vmul.f32 %v333_v59, %v1405_v56  ;;  %v381_v62 = vpop.permute.xlu1 %380 }
  0xf2   : > { %v382_v1 = vrot.slane %v381_v62, 4  ;;  %v350_v2 = vmul.f32 %v347_v55, %v337_v60 }
  0xf3   : > { %v468_v3 = vpop.permute.xlu0 %467  ;;  %v349_v4 = vmul.f32 %v347_v55, %v336_v61 }
  0xf4   : > { %v384_v5 = vsel %vm383_vm2, %v382_v1, %v381_v62  ;;  %v388_v6 = vmul.f32 %v382_v1, %v368_v63  ;;  %355 = vrot.lane.b32.xlu0 %v350_v2, %s1146_s24  ;;  %v475_v22 = vrot.slane %v468_v3, %v1402_v52 }
  0xf5   : > { %v387_v7 = vmul.f32 %v384_v5, %v1405_v56  ;;  %v431_v8 = vpop.permute.xlu1 %430  ;;  %353 = vrot.lane.b32.xlu1 %v349_v4, %s1146_s24 }
  0xf6   : > { %v432_v11 = vrot.slane %v431_v8, 4  ;;  %v401_v12 = vmul.f32 %v398_v0, %v388_v6  ;;  %v477_v29 = vmul.f32 %v475_v22, %v1371_v14 }
  0xf7   : > { %v400_v13 = vmul.f32 %v398_v0, %v387_v7 }
  0xf8   : > { %v433_v16 = vsel %vm361_vm3, %v432_v11, %v431_v8  ;;  %v437_v17 = vmul.f32 %v432_v11, %v418_v10  ;;  %v560_v18 = vpop.permute.xlu0 %559  ;;  %406 = vrot.lane.b32.xlu0 %v401_v12, %s1157_s9 }
  0xf9   : > { %v436_v19 = vmul.f32 %v433_v16, %v1405_v56  ;;  %404 = vrot.lane.b32.xlu1 %v400_v13, %s1157_s9  ;;  %v567_v27 = vrot.slane %v560_v18, %v1402_v52 }
  0xfa   : > { %v450_v21 = vmul.f32 %v447_v15, %v437_v17 }
  0xfb   : > { %v449_v23 = vmul.f32 %v447_v15, %v436_v19 }
  0xfc   : > { %v550_v24 = vpop.permute.xlu0 %549  ;;  %455 = vrot.lane.b32.xlu0 %v450_v21, %s1141_s22  ;;  %v279_v21 = vld [vmem:[#allocation2 + $0x8] sm:$0xf] }
  0xfd   : > { %v511_v20 = vpop.permute.xlu1 %510  ;;  %v551_v25 = vrot.slane %v550_v24, 4  ;;  %453 = vrot.lane.b32.xlu1 %v449_v23, %s1141_s22 }
  0xfe   : > { %v518_v35 = vrot.slane %v511_v20, %v1402_v52 }
  0xff   : > { %v553_v30 = vsel %vm552_vm4, %v551_v25, %v550_v24  ;;  %v557_v48 = vmul.f32 %v551_v25, %v537_v43 }
 0x100   : > { %v556_v31 = vmul.f32 %v553_v30, %v1371_v14  ;;  %v599_v34 = vpop.permute.xlu0 %598 }
 0x101   : > { %v501_v26 = vpop.permute.xlu1 %500  ;;  %v600_v37 = vrot.slane %v599_v34, 4  ;;  %479 = vrot.lane.b32.xlu1 %v477_v29, %s1155_s8  ;;  %v570_v55 = vmul.f32 %v567_v27, %v557_v48 }
 0x102   : > { %v502_v28 = vrot.slane %v501_v26, 4  ;;  %v569_v39 = vmul.f32 %v567_v27, %v556_v31 }
 0x103   : > { %v602_v41 = vsel %vm601_vm6, %v600_v37, %v599_v34  ;;  %v606_v53 = vmul.f32 %v600_v37, %v586_v50 }
 0x104   : > { %v504_v33 = vsel %vm503_vm5, %v502_v28, %v501_v26  ;;  %v508_v40 = vmul.f32 %v502_v28, %v488_v32  ;;  %v605_v44 = vmul.f32 %v602_v41, %v1371_v14  ;;  %v303_v0 = vpop.permute.xlu0 %302 }
 0x105   : > { %v507_v36 = vmul.f32 %v504_v33, %v1371_v14  ;;  %v609_v38 = vpop.permute.xlu1 %608  ;;  %573 = vrot.lane.b32.xlu1 %v569_v39, %s1159_s13  ;;  %v310_v5 = vrot.slane %v303_v0, %v1402_v52 }
 0x106   : > { %v616_v45 = vrot.slane %v609_v38, %v1402_v52  ;;  %v521_v49 = vmul.f32 %v518_v35, %v508_v40 }
 0x107   : > { %v520_v42 = vmul.f32 %v518_v35, %v507_v36 }
 0x108   : > { %v618_v46 = vmul.f32 %v616_v45, %v605_v44  ;;  %v619_v62 = vmul.f32 %v616_v45, %v606_v53 }
 0x109   : > { %524 = vrot.lane.b32.xlu0 %v520_v42, %s1158_s11 }
 0x10a   : > { %v658_v47 = vpop.permute.xlu1 %657  ;;  %622 = vrot.lane.b32.xlu1 %v618_v46, %s1160_s12 }
 0x10b   : > { %v665_v59 = vrot.slane %v658_v47, %v1402_v52 }
 0x10d   : > { %526 = vrot.lane.b32.xlu0 %v521_v49, %s1158_s11 }
 0x10e   : > { %v648_v51 = vpop.permute.xlu1 %647 }
 0x10f   : > { %v649_v54 = vrot.slane %v648_v51, 4 }
 0x111   : > { %v651_v58 = vsel %vm650_vm7, %v649_v54, %v648_v51  ;;  %575 = vrot.lane.b32.xlu0 %v570_v55, %s1159_s13  ;;  %v655_v1 = vmul.f32 %v649_v54, %v635_v57 }
 0x112   : > { %v654_v60 = vmul.f32 %v651_v58, %v1371_v14  ;;  %v292_v61 = vpop.permute.xlu1 %291 }
 0x113   : > { %v293_v63 = vrot.slane %v292_v61, 4  ;;  %v668_v6 = vmul.f32 %v665_v59, %v655_v1 }
 0x114   : > { %v667_v2 = vmul.f32 %v665_v59, %v654_v60 }
 0x115   : > { %624 = vrot.lane.b32.xlu0 %v619_v62, %s1160_s12  ;;  %v295_v3 = vsel %vm294_vm8, %v293_v63, %v292_v61  ;;  %v299_v26 = vmul.f32 %v293_v63, %v279_v21 }
 0x116   : > { %671 = vrot.lane.b32.xlu1 %v667_v2, %s1161_s14  ;;  %v298_v4 = vmul.f32 %v1405_v56, %v295_v3 }
 0x117   : > { %v313_v33 = vmul.f32 %v310_v5, %v299_v26 }
 0x118   : > { %v312_v7 = vmul.f32 %v310_v5, %v298_v4 }
 0x11a   : > { %673 = vrot.lane.b32.xlu1 %v668_v6, %s1161_s14 }
 0x166   : > { %v356_v14 = vpop.permute.xlu0 %355 }
 0x167   : > { %v354_v8 = vpop.permute.xlu1 %353  ;;  %v358_v10 = vrot.slane %v356_v14, 4  ;;  %v366_v39 = vadd.f32 %v356_v14, %v313_v33 }
 0x168   : > { %v357_v11 = vrot.slane %v354_v8, 4 }
 0x16a   : > { %v407_v12 = vpop.permute.xlu0 %406  ;;  %v360_v17 = vsel %vm359_vm9, %v357_v11, %v358_v10 }
 0x16b   : > { %v405_v13 = vpop.permute.xlu1 %404  ;;  %v409_v15 = vrot.slane %v407_v12, 4  ;;  %v362_v22 = vsel %vm361_vm3, %v354_v8, %v360_v17  ;;  %v416_v43 = vadd.f32 %v407_v12, %v366_v39 }
 0x16c   : > { %v408_v16 = vrot.slane %v405_v13, 4  ;;  %v365_v27 = vadd.f32 %v362_v22, %v312_v7 }
 0x16e   : > { %v456_v18 = vpop.permute.xlu0 %455  ;;  %v410_v52 = vsel %vm359_vm9, %v408_v16, %v409_v15 }
 0x16f   : > { %v458_v19 = vrot.slane %v456_v18, 4  ;;  %v454_v20 = vpop.permute.xlu1 %453  ;;  %v412_v24 = vsel %vm411_vm10, %v405_v13, %v410_v52  ;;  %v464_v47 = vadd.f32 %v456_v18, %v416_v43 }
 0x170   : > { %v457_v56 = vrot.slane %v454_v20, 4  ;;  %v415_v30 = vadd.f32 %v412_v24, %v365_v27  ;;  %v690_v24 = vld [vmem:[%s1453_s27] sm:$0xf] }
 0x171   : > { %v712_v27 = vld [vmem:[%s267_s7] sm:$0xf] }
 0x172   : > { %v459_v23 = vsel %vm359_vm9, %v457_v56, %v458_v19 }
 0x173   : > { %v480_v25 = vpop.permute.xlu1 %479  ;;  %v460_v28 = vsel %vm332_vm1, %v454_v20, %v459_v23 }
 0x174   : > { %v481_v29 = vrot.slane %v480_v25, 4  ;;  %v463_v34 = vadd.f32 %v460_v28, %v415_v30 }
 0x176   : > { %v482_v36 = vsel %vm294_vm8, %v481_v29, %v480_v25  ;;  %v486_v50 = vadd.f32 %v481_v29, %v464_v47 }
 0x177   : > { %v574_v32 = vpop.permute.xlu1 %573  ;;  %v485_v40 = vadd.f32 %v482_v36, %v463_v34 }
 0x178   : > { %v577_v42 = vrot.slane %v574_v32, 4 }
 0x17a   : > { %v579_v48 = vsel %vm578_vm12, %v577_v42, %v574_v32 }
 0x17b   : > { %v525_v31 = vpop.permute.xlu0 %524 }
 0x17c   : > { %v528_v35 = vrot.slane %v525_v31, 4  ;;  %v623_v41 = vpop.permute.xlu1 %622 }
 0x17d   : > { %v626_v45 = vrot.slane %v623_v41, 4 }
 0x17e   : > { %v530_v37 = vsel %vm529_vm11, %v528_v35, %v525_v31 }
 0x17f   : > { %v527_v38 = vpop.permute.xlu0 %526  ;;  %v534_v44 = vadd.f32 %v530_v37, %v485_v40  ;;  %v628_v53 = vsel %vm627_vm13, %v626_v45, %v623_v41 }
 0x180   : > { %v531_v49 = vsel %vm529_vm11, %v528_v35, %v527_v38 }
 0x181   : > { %v583_v51 = vadd.f32 %v579_v48, %v534_v44  ;;  %v535_v57 = vadd.f32 %v531_v49, %v486_v50 }
 0x183   : > { %v576_v46 = vpop.permute.xlu0 %575  ;;  %v632_v61 = vadd.f32 %v628_v53, %v583_v51 }
 0x184   : > { %v580_v54 = vsel %vm578_vm12, %v577_v42, %v576_v46 }
 0x185   : > { %v584_v62 = vadd.f32 %v580_v54, %v535_v57 }
 0x187   : > { %v625_v55 = vpop.permute.xlu0 %624 }
 0x188   : > { %v672_v58 = vpop.permute.xlu1 %671  ;;  %v629_v59 = vsel %vm627_vm13, %v626_v45, %v625_v55 }
 0x189   : > { %v675_v60 = vrot.slane %v672_v58, 4  ;;  %v633_v0 = vadd.f32 %v629_v59, %v584_v62 }
 0x18b   : > { %v677_v63 = vsel %vm676_vm14, %v675_v60, %v672_v58 }
 0x18c   : > { %v681_v1 = vadd.f32 %v677_v63, %v632_v61  ;;  %v674_v2 = vpop.permute.xlu1 %673 }
 0x18d   : > { %v678_v3 = vsel %vm676_vm14, %v675_v60, %v674_v2 }
 0x18e   : > { %v682_v4 = vadd.f32 %v678_v3, %v633_v0  ;;  %v693_v5 = vcombine.high %v681_v1, %v681_v1  ;;  %v713_v6 = vmul.f32 %v681_v1, %v681_v1 }
 0x190   : > { %698 = vrot.lane.b32.xlu0 %v682_v4, %s1154_s26  ;;  %696 = vrot.lane.b32.xlu1 %v693_v5, %s1154_s26  ;;  %v717_v7 = vcombine.high %v713_v6, %v713_v6  ;;  %v714_v14 = vmul.f32 %v682_v4, %v682_v4 }
 0x194   : > { %694 = vrot.lane.b32.xlu0 %v681_v1, %s1154_s26  ;;  %718 = vrot.lane.b32.xlu1 %v713_v6, %s1154_s26 }
 0x198   : > { %720 = vrot.lane.b32.xlu0 %v717_v7, %s1154_s26  ;;  %722 = vrot.lane.b32.xlu1 %v714_v14, %s1154_s26 }
 0x202   : > { %v699_v8 = vpop.permute.xlu0 %698  ;;  %v697_v10 = vpop.permute.xlu1 %696 }
 0x203   : > { %v701_v11 = vsel %vm650_vm7, %v697_v10, %v699_v8 }
 0x204   : > { %v705_v17 = vsel %vm359_vm9, %v701_v11, 0.0 }
 0x206   : > { %v695_v12 = vpop.permute.xlu0 %694  ;;  %v719_v13 = vpop.permute.xlu1 %718 }
 0x207   : > { %v700_v15 = vsel %vm650_vm7, %v695_v12, %v697_v10 }
 0x208   : > { %v704_v16 = vsel %vm359_vm9, %v700_v15, 0.0 }
 0x209   : > { %v706_v18 = vadd.f32 %v705_v17, %v704_v16 }
 0x20a   : > { %v721_v19 = vpop.permute.xlu0 %720  ;;  %v723_v20 = vpop.permute.xlu1 %722 }
 0x20b   : > { %v724_v52 = vsel %vm650_vm7, %v719_v13, %v721_v19  ;;  %v725_v56 = vsel %vm650_vm7, %v721_v19, %v723_v20  ;;  %707 = vadd.xlane.f32.xlu0 %v706_v18 }
 0x20c   : > { %v728_v21 = vsel %vm359_vm9, %v724_v52, 0.0  ;;  %v729_v22 = vsel %vm359_vm9, %v725_v56, 0.0 }
 0x20d   : > { %v730_v23 = vadd.f32 %v729_v22, %v728_v21 }
 0x20f   : > { %731 = vadd.xlane.f32.xlu1 %v730_v23 }
 0x298   : > { %v708_v25 = vpop.xlane.xlu0 %707 }
 0x299   : > { %v709_v26 = vadd.f32 %v708_v25, %v690_v24 }
 0x29b   : > { %711 = vst.msk [vmem:[%s1453_s27] sm:$0xf] %vm687_vm15, %v709_v26 }
 0x29c   : > { %v732_v28 = vpop.xlane.xlu1 %731 }
 0x29d   : > { %v733_v29 = vadd.f32 %v732_v28, %v712_v27 }
 0x29f   : > { %734 = vst.msk [vmem:[%s267_s7] sm:$0xf] %vm687_vm15, %v733_v29 }
 0x2a0 PF: > { %s19_s20 = sadd.s32 1, %s1131_s20   ;;  %s1512_s22 = smov %s1303_s15 }
 0x2a1   : > { %p16_p9 = scmp.ge.s32.totalorder %s19_s20, 4   ;;  %s1513_s15 = smov %s1115_s16 }
 0x2a2   : > { %s1514_s16 = smov %s1119_s17  ;;  %s1515_s17 = smov %s1512_s22 }
 0x2a3   : > { %s1516_s18 = smov %s1127_s19  ;;  %s1517_s19 = smov %s1519_s10 }
 0x2a4   :  { %18 = sbr.rel (!%p16_p9) target bundleno = 5 (0x5), region = 96 }
 0x2ab   :  { %768 = vsyncpa [#allocation4], 1 }
 0x2ac   :  { %770 = vsyncpa [#allocation4 + $0x1], 1 }
 0x2ad   :  { %771 = vsyncpa [#allocation6], 1 }

</bundles_post_ra>
